<compile_context>
chip_gen: v7x
topology: tpu7x:2x2x1
jax: 0.10.0
libtpu: 0.0.40
codegen_flags: <defaults>
</compile_context>

<pallas_src>
import functools

import jax
import jax.numpy as jnp
from jax.experimental import pallas as pl
from jax.experimental.pallas import tpu as pltpu


# Scoped VMEM limit: generous on v5e/v6e (128 MiB physical), safe on v7x
# (64 MiB physical per TensorCore).
_VMEM_LIMIT_BYTES = 48 * 1024 * 1024
# Per-input-block byte target for the streaming passes (~1-4 MiB sweet spot).
_BLOCK_BYTE_TARGET = 2 * 1024 * 1024
# VMEM budget used to decide whether the fused single-pass path fits.
_FUSED_VMEM_BUDGET = 40 * 1024 * 1024


# ---------------------------------------------------------------------------
# Kernels
# ---------------------------------------------------------------------------
def _fused_kernel(x_ref, w1_ref, w2t_ref, o_ref, *, inv_s):
    """Pool + excitation MLP + scale for one resident (C, S) batch slice.

    x_ref:   (1, C, S) input slice (full spatial extent, resident in VMEM).
    w1_ref:  (C, Cr)   fc1 weight, layout (in, out).
    w2t_ref: (C, Cr)   fc2 weight, pre-transposed to (out, in) == (C, Cr).
    o_ref:   (1, C, S) output slice.
    """
    # Global mean pool over the lane (spatial) axis, f32 accumulation.
    y = jnp.sum(x_ref[0], axis=-1, keepdims=True, dtype=jnp.float32) * inv_s
    # fc1 + ReLU:  z[j] = relu(sum_c y[c] * w1[c, j])   -> (1, Cr)
    z = jnp.maximum(
        jnp.sum(y * w1_ref[...].astype(jnp.float32), axis=0, keepdims=True),
        0.0,
    )
    # fc2 + sigmoid: g[c] = sigmoid(sum_j z[j] * w2[j, c]) -> (C, 1)
    g = jax.nn.sigmoid(
        jnp.sum(z * w2t_ref[...].astype(jnp.float32), axis=1, keepdims=True)
    )
    # Channel-wise scale in the I/O dtype (bf16-friendly on v6e/v7x).
    o_ref[0] = (x_ref[0] * g.astype(o_ref.dtype)).astype(o_ref.dtype)


def _pool_sum_kernel(x_ref, sum_ref, *, true_s, tile_s):
    """Streaming global-sum pool with in-kernel masking of the ragged tail.

    Grid: (B, n_outer, n_inner); the spatial tile index is o * n_inner + i.
    sum_ref (1, C, 1) f32 is resident across the inner ("arbitrary") axis and
    accumulates a partial sum per (batch, outer-chunk).
    """
    i = pl.program_id(2)

    @pl.when(i == 0)
    def _():
        sum_ref[...] = jnp.zeros_like(sum_ref)

    # Global spatial tile index and number of valid lanes in this tile.
    t = pl.program_id(1) * pl.num_programs(2) + i
    remaining = true_s - t * tile_s  # may be <= 0 for clamped/duplicate tiles
    lane = jax.lax.broadcasted_iota(jnp.int32, x_ref.shape, 2)
    x = jnp.where(lane < remaining, x_ref[...], 0)
    sum_ref[...] += jnp.sum(x, axis=-1, keepdims=True, dtype=jnp.float32)


def _scale_kernel(x_ref, g_ref, o_ref):
    """Channel-wise scale: minimal 1-load / 1-bcast-mul / 1-store body.

    Ragged last spatial tile is safe: out-of-range lanes are masked on store
    by Pallas, and the (garbage) input lanes are never stored.
    """
    o_ref[...] = (x_ref[...] * g_ref[...]).astype(o_ref.dtype)


# ---------------------------------------------------------------------------
# Wrapper
# ---------------------------------------------------------------------------
def _round_up(x, m):
    return (x + m - 1) // m * m


def _choose_spatial_tile(S, C, itemsize):
    """Lane-dense spatial tile targeting ~2 MiB per (1, C, TS) block."""
    row_bytes = max(C * itemsize, 1)
    ts = _BLOCK_BYTE_TARGET // row_bytes
    ts = (ts // 128) * 128
    ts = max(ts, 128)
    ts = min(ts, 32768)
    ts = min(ts, _round_up(S, 128))
    return ts


def se_block(x, w1, w2, *, donate_x=False, force_two_pass=False,
             spatial_tile=None):
    """SEBlock forward.

    x:  (B, C, D, H, W), float32 or bfloat16.
    w1: (C, C//r)  fc1 weight, stored (in, out) i.e. transposed vs torch (out,in).
    w2: (C//r, C)  fc2 weight, stored (in, out).
    """
    B, C, D, H, W = x.shape
    S = D * H * W
    itemsize = jnp.dtype(x.dtype).itemsize
    x_flat = x.reshape(B, C, S)

    alias_kwargs = {"input_output_aliases": {0: 0}} if donate_x else {}

    # ---------------- Fused single-pass path (small slices) ----------------
    slice_bytes = C * S * itemsize
    # Estimate: 2x double-buffered input + 2x output blocks (+ possible f32
    # temp for bf16 accumulation) must fit the scoped VMEM budget.
    est_vmem = 4 * slice_bytes + (slice_bytes * 4) // itemsize
    use_fused = (not force_two_pass) and est_vmem <= _FUSED_VMEM_BUDGET

    if use_fused:
        w2t = jnp.transpose(w2)  # (C, Cr): keep C on the sublane axis in-kernel
        Cr = w1.shape[1]
        out_flat = pl.pallas_call(
            functools.partial(_fused_kernel, inv_s=float(1.0 / S)),
            out_shape=jax.ShapeDtypeStruct((B, C, S), x.dtype),
            grid_spec=pltpu.PrefetchScalarGridSpec(
                num_scalar_prefetch=0,
                grid=(B,),
                in_specs=[
                    pl.BlockSpec((1, C, S), lambda b: (b, 0, 0)),
                    pl.BlockSpec((C, Cr), lambda b: (0, 0)),
                    pl.BlockSpec((C, Cr), lambda b: (0, 0)),
                ],
                out_specs=pl.BlockSpec((1, C, S), lambda b: (b, 0, 0)),
            ),
            compiler_params=pltpu.CompilerParams(
                dimension_semantics=("parallel",),
                vmem_limit_bytes=_VMEM_LIMIT_BYTES,
            ),
            **alias_kwargs,
        )(x_flat, w1, w2t)
        return out_flat.reshape(B, C, D, H, W)

    # ---------------- Two-pass streaming path (large slices) ---------------
    if spatial_tile is not None:
        TS = spatial_tile
        assert TS % 128 == 0, "spatial_tile must be a multiple of 128"
    else:
        TS = _choose_spatial_tile(S, C, itemsize)

    n_tiles = pl.cdiv(S, TS)
    # Split the spatial reduction into 2 independent "parallel" chunks so both
    # v7x TensorCores stay busy even when B is small; the partial sums are
    # folded together in the XLA MLP step below.
    n_outer = 2 if n_tiles >= 2 else 1
    n_inner = pl.cdiv(n_tiles, n_outer)

    def x_pool_map(b, o, i):
        # Clamp duplicate trailing tiles (when n_outer * n_inner > n_tiles) to
        # the last valid block; the kernel masks them to a zero contribution.
        t = jnp.minimum(o * n_inner + i, n_tiles - 1)
        return (b, 0, t)

    # -------- Pass 1: partial pooled sums (B, C, n_outer), f32 ------------
    pooled = pl.pallas_call(
        functools.partial(_pool_sum_kernel, true_s=S, tile_s=TS),
        out_shape=jax.ShapeDtypeStruct((B, C, n_outer), jnp.float32),
        grid_spec=pltpu.PrefetchScalarGridSpec(
            num_scalar_prefetch=0,
            grid=(B, n_outer, n_inner),  # reduction (inner spatial) axis last
            in_specs=[pl.BlockSpec((1, C, TS), x_pool_map)],
            out_specs=pl.BlockSpec((1, C, 1), lambda b, o, i: (b, 0, o)),
        ),
        compiler_params=pltpu.CompilerParams(
            dimension_semantics=("parallel", "parallel", "arbitrary"),
            vmem_limit_bytes=_VMEM_LIMIT_BYTES,
        ),
    )(x_flat)

    # -------- Excitation MLP (tiny; batched over all B, plain XLA, f32) ---
    y = jnp.sum(pooled, axis=-1) * jnp.float32(1.0 / S)            # (B, C)
    z = jnp.maximum(jnp.dot(y, w1.astype(jnp.float32)), 0.0)       # (B, C//r)
    gate = jax.nn.sigmoid(jnp.dot(z, w2.astype(jnp.float32)))      # (B, C)
    # Cast once here so the hot scale loop multiplies in the I/O dtype.
    gate = gate.astype(x.dtype)[:, :, None]                        # (B, C, 1)

    # -------- Pass 2: channel-wise scale -----------------------------------
    out_flat = pl.pallas_call(
        _scale_kernel,
        out_shape=jax.ShapeDtypeStruct((B, C, S), x.dtype),
        grid_spec=pltpu.PrefetchScalarGridSpec(
            num_scalar_prefetch=0,
            grid=(B, n_tiles),
            in_specs=[
                pl.BlockSpec((1, C, TS), lambda b, s: (b, 0, s)),
                pl.BlockSpec((1, C, 1), lambda b, s: (b, 0, 0)),
            ],
            out_specs=pl.BlockSpec((1, C, TS), lambda b, s: (b, 0, s)),
        ),
        compiler_params=pltpu.CompilerParams(
            dimension_semantics=("parallel", "parallel"),
            vmem_limit_bytes=_VMEM_LIMIT_BYTES,
        ),
        **alias_kwargs,
    )(x_flat, gate)

    return out_flat.reshape(B, C, D, H, W)


# ---------------------------------------------------------------------------
# Pure-JAX reference
# ---------------------------------------------------------------------------
def reference_se_block(x, w1, w2):
    y = jnp.mean(x.astype(jnp.float32), axis=(2, 3, 4))            # (B, C)
    y = jnp.maximum(y @ w1.astype(jnp.float32), 0.0)
    y = jax.nn.sigmoid(y @ w2.astype(jnp.float32))
    return (x.astype(jnp.float32) * y[:, :, None, None, None]).astype(x.dtype)


if __name__ == "__main__":
    # Small shapes consistent with SEBlock(channel=32, reduction=16).
    B, C = 2, 32
    reduction = 16
    Cr = C // reduction

    key = jax.random.PRNGKey(0)
    kx, k1, k2, kx2 = jax.random.split(key, 4)
    # Parameters stored already-transposed vs. PyTorch's (out, in) layout.
    w1 = jax.random.normal(k1, (C, Cr), dtype=jnp.float32) * 0.1
    w2 = jax.random.normal(k2, (Cr, C), dtype=jnp.float32) * 0.1

    # 1) Fused single-pass path (per-batch slice fits comfortably in VMEM).
    x = jax.random.normal(kx, (B, C, 8, 8, 8), dtype=jnp.float32)
    out = jax.block_until_ready(se_block(x, w1, w2))
    ref = reference_se_block(x, w1, w2)
    assert jnp.allclose(out, ref, atol=1e-4, rtol=1e-4), "fused path mismatch"

    # 2) Two-pass streaming path with a ragged spatial axis (576 = 4*128 + 64):
    #    exercises the in-kernel lane masking, the clamped duplicate tile of
    #    the megacore spatial split, and the masked edge store of pass 2.
    x2 = jax.random.normal(kx2, (B, C, 8, 8, 9), dtype=jnp.float32)
    out2 = jax.block_until_ready(
        se_block(x2, w1, w2, force_two_pass=True, spatial_tile=128))
    ref2 = reference_se_block(x2, w1, w2)
    assert jnp.allclose(out2, ref2, atol=1e-4, rtol=1e-4), "two-pass mismatch"

    print("KERNEL_OK")
</pallas_src>

<mosaic_0001>
module attributes {stable_mosaic.version = 11 : i64} {
  func.func @_fused_kernel(%arg0: i32, %arg1: memref<1x32x512xf32, #tpu.memory_space<vmem>>, %arg2: memref<32x2xf32, #tpu.memory_space<vmem>>, %arg3: memref<32x2xf32, #tpu.memory_space<vmem>>, %arg4: memref<1x32x512xf32, #tpu.memory_space<vmem>>) attributes {dimension_semantics = [#tpu.dimension_semantics<parallel>], iteration_bounds = array<i64: 2>, scalar_prefetch = 0 : i64, scratch_operands = 0 : i64, tpu.core_type = #tpu.core_type<tc>, window_params = [{transform_indices = @transform_0, window_bounds = array<i64: 1, 32, 512>}, {pipeline_mode = #tpu.pipeline_mode<synchronous>, transform_indices = @transform_1, window_bounds = array<i64: 32, 2>}, {pipeline_mode = #tpu.pipeline_mode<synchronous>, transform_indices = @transform_2, window_bounds = array<i64: 32, 2>}, {transform_indices = @transform_3, window_bounds = array<i64: 1, 32, 512>}]} {
    %c0 = arith.constant 0 : index
    %c0_0 = arith.constant 0 : index
    %c0_1 = arith.constant 0 : index
    %0 = vector.load %arg1[%c0, %c0_0, %c0_1] : memref<1x32x512xf32, #tpu.memory_space<vmem>>, vector<1x32x512xf32>
    %1 = vector.shape_cast %0 : vector<1x32x512xf32> to vector<32x512xf32>
    %cst = arith.constant dense<0.000000e+00> : vector<32xf32>
    %2 = vector.multi_reduction <add>, %1, %cst [1] : vector<32x512xf32> to vector<32xf32>
    %3 = vector.shape_cast %2 : vector<32xf32> to vector<32x1xf32>
    %cst_2 = arith.constant 0.001953125 : f32
    %4 = vector.broadcast %cst_2 : f32 to vector<32x1xf32>
    %5 = arith.mulf %3, %4 : vector<32x1xf32>
    %c0_3 = arith.constant 0 : index
    %c0_4 = arith.constant 0 : index
    %6 = vector.load %arg2[%c0_3, %c0_4] : memref<32x2xf32, #tpu.memory_space<vmem>>, vector<32x2xf32>
    %7 = vector.broadcast %5 : vector<32x1xf32> to vector<32x2xf32>
    %8 = arith.mulf %7, %6 : vector<32x2xf32>
    %cst_5 = arith.constant dense<0.000000e+00> : vector<2xf32>
    %9 = vector.multi_reduction <add>, %8, %cst_5 [0] : vector<32x2xf32> to vector<2xf32>
    %10 = vector.shape_cast %9 : vector<2xf32> to vector<1x2xf32>
    %cst_6 = arith.constant 0.000000e+00 : f32
    %11 = vector.broadcast %cst_6 : f32 to vector<1x2xf32>
    %12 = arith.maximumf %10, %11 : vector<1x2xf32>
    %c0_7 = arith.constant 0 : index
    %c0_8 = arith.constant 0 : index
    %13 = vector.load %arg3[%c0_7, %c0_8] : memref<32x2xf32, #tpu.memory_space<vmem>>, vector<32x2xf32>
    %14 = vector.broadcast %12 : vector<1x2xf32> to vector<32x2xf32>
    %15 = arith.mulf %14, %13 : vector<32x2xf32>
    %cst_9 = arith.constant dense<0.000000e+00> : vector<32xf32>
    %16 = vector.multi_reduction <add>, %15, %cst_9 [1] : vector<32x2xf32> to vector<32xf32>
    %17 = vector.shape_cast %16 : vector<32xf32> to vector<32x1xf32>
    %18 = arith.negf %17 : vector<32x1xf32>
    %19 = math.exp %18 : vector<32x1xf32>
    %cst_10 = arith.constant 1.000000e+00 : f32
    %20 = vector.broadcast %cst_10 : f32 to vector<32x1xf32>
    %21 = arith.addf %20, %19 : vector<32x1xf32>
    %22 = arith.divf %20, %21 : vector<32x1xf32>
    %c0_11 = arith.constant 0 : index
    %c0_12 = arith.constant 0 : index
    %c0_13 = arith.constant 0 : index
    %23 = vector.load %arg1[%c0_11, %c0_12, %c0_13] : memref<1x32x512xf32, #tpu.memory_space<vmem>>, vector<1x32x512xf32>
    %24 = vector.shape_cast %23 : vector<1x32x512xf32> to vector<32x512xf32>
    %25 = vector.broadcast %22 : vector<32x1xf32> to vector<32x512xf32>
    %26 = arith.mulf %24, %25 : vector<32x512xf32>
    %c0_14 = arith.constant 0 : index
    %c0_15 = arith.constant 0 : index
    %c0_16 = arith.constant 0 : index
    %27 = vector.load %arg4[%c0_14, %c0_15, %c0_16] : memref<1x32x512xf32, #tpu.memory_space<vmem>>, vector<1x32x512xf32>
    %28 = vector.shape_cast %27 : vector<1x32x512xf32> to vector<32x512xf32>
    %29 = vector.shape_cast %26 : vector<32x512xf32> to vector<1x32x512xf32>
    tpu.vector_store %arg4[%c0_14, %c0_15, %c0_16], %29 {strides = array<i32>} : memref<1x32x512xf32, #tpu.memory_space<vmem>>, vector<1x32x512xf32>,
    return
  }
  func.func @transform_0(%arg0: i32) -> (i32, i32, i32) {
    %c0_i32 = arith.constant 0 : i32
    %c0_i32_0 = arith.constant 0 : i32
    %c0_i32_1 = arith.constant 0 : i32
    return %arg0, %c0_i32, %c0_i32_0 : i32, i32, i32
  }
  func.func @transform_1(%arg0: i32) -> (i32, i32) {
    %c0_i32 = arith.constant 0 : i32
    %c0_i32_0 = arith.constant 0 : i32
    %c0_i32_1 = arith.constant 0 : i32
    return %c0_i32, %c0_i32_0 : i32, i32
  }
  func.func @transform_2(%arg0: i32) -> (i32, i32) {
    %c0_i32 = arith.constant 0 : i32
    %c0_i32_0 = arith.constant 0 : i32
    %c0_i32_1 = arith.constant 0 : i32
    return %c0_i32, %c0_i32_0 : i32, i32
  }
  func.func @transform_3(%arg0: i32) -> (i32, i32, i32) {
    %c0_i32 = arith.constant 0 : i32
    %c0_i32_0 = arith.constant 0 : i32
    %c0_i32_1 = arith.constant 0 : i32
    return %arg0, %c0_i32, %c0_i32_0 : i32, i32, i32
  }
}

</mosaic_0001>

<bundles_post_ra>
// kernel: tpu_custom_call.1
= control target key start
LH: loop header
LB: loop body
LE: loop exit
PB: predicated region body
PF: predicated region fallthrough
CT: control target
= control target key end

     0   :  { %8 = vsyncpa [#allocation3], 0  ;;  %s887_s0 = inlined_call_operand.hbm [shape: f32[2,32,512], index: 0, kind: input, shape index: {}]   ;;  %s888_s1 = inlined_call_operand.vmem [shape: f32[32,2], index: 1, kind: input, shape index: {}]   ;;  %s889_s2 = inlined_call_operand.vmem [shape: f32[32,2], index: 2, kind: input, shape index: {}]   ;;  %s890_s3 = inlined_call_operand.hbm [shape: f32[2,32,512], index: 3, kind: output, shape index: {}]  }
   0x1   :  { %10 = vsyncpa [#allocation3 + $0x1], 0 }
   0x2   :  { %11 = vsyncpa [#allocation4], 0 }
   0x3   :  { %13 = vsyncpa [#allocation4 + $0x1], 0  ;;  %s625_s12 = smov 0   ;;  %s627_s13 = smov 0  }
   0x4   :  { %s629_s14 = smov 0   ;;  %s631_s15 = smov 0  }
   0x5 LB: > { %s646_s16 = sadd.s32 4294967295, %s597_s15   ;;  %s415_s17 = sadd.s32 4294967294, %s597_s15   ;;  %s597_s15 = sphi %s631_s15, %s903_s15   ;;  %s593_s14 = sphi %s629_s14, %s902_s14   ;;  %s589_s13 = sphi %s627_s13, %s901_s13   ;;  %s585_s12 = sphi %s625_s12, %s900_s12  }
   0x6   : > { %s650_s18 = sadd.s32 1, %s597_s15   ;;  %s26_s19 = sadd.s32 1, %s593_s14 }
   0x7   : > { %s23_s20 = ssub.s32 %s597_s15, %s650_s18  ;;  %p33_p0 = scmp.ne.s32.totalorder %s593_s14, %s589_s13 }
   0x8   : > { %p24_p1 = scmp.eq.s32.totalorder %s23_s20, 0  ;;  %p34_p2 = scmp.eq.s32.totalorder %s597_s15, 0 }
   0x9   : > { %p39_p3 = scmp.ne.s32.totalorder %s589_s13, %s585_s12  ;;  %p40_p4 = scmp.eq.s32.totalorder %s646_s16, 0 }
   0xa   : > { %s662_s21 = scalar_select %p24_p1, %s593_s14, %s26_s19  }
   0xb   : > { %p664_p5 = por %p34_p2, %p33_p0  ;;  %p668_p6 = por %p40_p4, %p39_p3 }
   0xc   : > { %p105_p7 = scmp.eq.s32.totalorder %s646_s16, 1  ;;  %p111_p8 = scmp.eq.s32.totalorder %s415_s17, 1 }
   0xd   : > { %p447_p10 = scmp.lt.s32.totalorder %s597_s15, 2  ;;  %s137_s26 = sand.u32 1, %s593_s14  }
   0xe   : > { %p675_p11 = por %p105_p7, %p33_p0  ;;  %p679_p12 = por %p111_p8, %p39_p3 }
   0xf   : > { %s433_s27 = sshll.u32 %s597_s15, 11  ;;  %s418_s28 = sshll.u32 %s137_s26, 7 }
  0x10   : > { %s894_s24 = scalar_select %p675_p11, 1, 0 }
  0x11   : > { %s895_s25 = scalar_select %p679_p12, 1, 0 }
  0x12   : > { %s688_s4 = scalar_lea.hbm %s887_s0, %s433_s27  ;;  %s141_s5 = scalar_lea.vmem [#allocation2], %s418_s28 }
  0x13   : > { %s148_s6 = sshll.u32 %s141_s5, 4  ;;  %p692_p13 = pnand %p447_p10, %p664_p5  ;;  %s696_s6 = int_to_ptr.vmem [resolvable:$true] %s148_s6 }
  0x14   : > { %s698_s8 = scalar_lea.sflag [#allocation3], %s137_s26  ;;  %s501_s9 = scalar_lea.hbm %s688_s4, 2048 }
  0x15   : > { %p502_p0 = scmp.ne.s32.totalorder %s688_s4, %s501_s9  ;;  %p503_p1 = pneg %p692_p13 }
  0x16   : > { %s506_s17 = scalar_lea.hbm %s887_s0, 4096  ;;  %p507_p4 = scmp.lt.u32.totalorder %s688_s4, %s887_s0 }
  0x17   : > { %p504_p2 = pnand %p503_p1, %p502_p0  ;;  %p508_p5 = scmp.lt.u32.totalorder %s506_s17, %s501_s9 }
  0x18   : > { %p510_p8 = scmp.lt.u32.totalorder %s501_s9, %s688_s4 }
  0x19   : > { %p505_p3 = pneg %p504_p2  ;;  %p509_p7 = por %p508_p5, %p507_p4 }
  0x1b   : > { %p511_p10 = por %p510_p8, %p509_p7 }
  0x1d   : > { %p512_p9 = pnand %p511_p10, %p505_p3 }
  0x1f   : > { %515 = shalt.err (!%p512_p9)
}
  0x20   : > { %s516_s22 = scalar_lea.vmem %s696_s6, 2048  ;;  %s599_s26 = smov [#allocation2]  }
  0x21   : > { %p517_p0 = scmp.ne.s32.totalorder %s696_s6, %s516_s22  ;;  %s521_s27 = sshll.u32 %s599_s26, 4  ;;  %s522_s27 = int_to_ptr.vmem [resolvable:$false] %s521_s27 }
  0x22   : > { %s523_s28 = scalar_lea.vmem %s522_s27, 4096  ;;  %p524_p11 = scmp.lt.s32.totalorder %s696_s6, %s522_s27 }
  0x23   : > { %p519_p2 = pnand %p517_p0, %p503_p1  ;;  %p525_p4 = scmp.lt.s32.totalorder %s523_s28, %s516_s22 }
  0x25   : > { %p520_p12 = pneg %p519_p2  ;;  %p526_p5 = por %p525_p4, %p524_p11 }
  0x27   : > { %p527_p7 = pnand %p526_p5, %p520_p12 }
  0x29   : > { %530 = shalt.err (!%p527_p7)
}
  0x2a   : > { %s600_s29 = smov 512   ;;  %s601_s30 = smov 32  }
  0x2b   : > { %442 = dma.hbm_to_vmem [thread:$0]  (!%p692_p13), %s688_s4, 2048, %s696_s6, %s698_s8, %s600_s29, %s600_s29, %s601_s30  }
  0x2c   : > { %p421_p9 = scmp.ge.s32.totalorder %s597_s15, 1  ;;  %p156_p1 = scmp.lt.s32.totalorder %s597_s15, 3 }
  0x2e   : > { %p157_p3 = pnand %p421_p9, %p156_p1 }
  0x2f   : > { %s729_s5 = sand.u32 (!%p157_p3), 1, %s589_s13  }
  0x30   : > { %160 = sbr.rel (%p157_p3) target bundleno = 429 (0x1ad), region = 32  ;;  %s422_s9 = sshll.u32 (!%p157_p3), %s729_s5, 7 }
  0x31   : > { %s163_s10 = scalar_lea.sflag (!%p157_p3), [#allocation3], %s729_s5  ;;  %s166_s11 = scalar_lea.vmem (!%p157_p3), [#allocation2], %s422_s9 }
  0x37   : > { %576 = dma.done.wait (%p668_p6), %s163_s10, 2048  }
  0x38   : > { %578 = vsyncadd (%p668_p6), %s163_s10, 4294965248  ;;  %v739_v0 = vld [vmem:[%s166_s11] sm:$0xff]  ;;  %v741_v1 = vld [vmem:[%s166_s11 + $0x8] sm:$0xff]  ;;  %vm237_vm0 = vcmask 15360   ;;  %s434_s23 = sshll.u32 %s646_s16, 11  ;;  %s188_s4 = scalar_lea.vmem [#allocation5], %s422_s9 }
  0x39   : > { %v743_v2 = vld [vmem:[%s166_s11 + $0x10] sm:$0xff]  ;;  %v205_v3 = vadd.f32 %v741_v1, %v739_v0  ;;  %v747_v4 = vld [vmem:[%s166_s11 + $0x40] sm:$0xff]  ;;  %v749_v5 = vld [vmem:[%s166_s11 + $0x48] sm:$0xff]  ;;  %s342_s6 = sshll.u32 %s188_s4, 4  ;;  %s837_s7 = scalar_lea.hbm %s890_s3, %s434_s23  ;;  %s839_s6 = int_to_ptr.vmem [resolvable:$true] %s342_s6 }
  0x3a   : > { %v751_v6 = vld [vmem:[%s166_s11 + $0x18] sm:$0xff]  ;;  %v753_v7 = vld [vmem:[%s166_s11 + $0x50] sm:$0xff]  ;;  %v215_v8 = vadd.f32 %v749_v5, %v747_v4  ;;  %v757_v9 = vld [vmem:[%s166_s11 + $0x20] sm:$0xff]  ;;  %s329_s8 = scalar_lea.sflag [#allocation4], %s729_s5  ;;  %s531_s17 = scalar_lea.vmem %s839_s6, 2048 }
  0x3b   : > { %v206_v10 = vadd.f32 %v205_v3, %v743_v2  ;;  %v760_v11 = vld [vmem:[%s166_s11 + $0x58] sm:$0xff]  ;;  %v762_v12 = vld [vmem:[%s166_s11 + $0x28] sm:$0xff]  ;;  %v764_v13 = vld [vmem:[%s166_s11 + $0x30] sm:$0xff]  ;;  %p532_p6 = scmp.ne.s32.totalorder %s839_s6, %s531_s17  ;;  %p897_p11 = scmp.ne.s32.totalorder %s894_s24, 0 }
  0x3c   : > { %v216_v14 = vadd.f32 %v215_v8, %v753_v7  ;;  %v210_v15 = vadd.f32 %v762_v12, %v757_v9  ;;  %v769_v16 = vld [vmem:[%s166_s11 + $0x60] sm:$0xff]  ;;  %v771_v17 = vld [vmem:[%s166_s11 + $0x68] sm:$0xff]  ;;  %v773_v18 = vld [vmem:[%s166_s11 + $0x70] sm:$0xff]  ;;  %s602_s19 = smov [#allocation5]  }
  0x3d   : > { %v207_v19 = vadd.f32 %v206_v10, %v751_v6  ;;  %v776_v20 = vld [vmem:[%s166_s11 + $0x38] sm:$0xff]  ;;  %v220_v21 = vadd.f32 %v771_v17, %v769_v16  ;;  %v229_v31 = vld [vmem:[%s888_s1] sm:$0xff]  ;;  %v231_v33 = vld [vmem:[%s888_s1 + $0x10] sm:$0xff]  ;;  %p533_p12 = pnand %p532_p6, %p897_p11  ;;  %s535_s20 = sshll.u32 %s602_s19, 4  ;;  %s536_s20 = int_to_ptr.vmem [resolvable:$false] %s535_s20 }
  0x3e   : > { %v217_v22 = vadd.f32 %v216_v14, %v760_v11  ;;  %v211_v23 = vadd.f32 %v210_v15, %v764_v13  ;;  %v782_v24 = vld [vmem:[%s166_s11 + $0x78] sm:$0xff]  ;;  %v230_v34 = vld [vmem:[%s888_s1 + $0x8] sm:$0xff]  ;;  %v252_v58 = vld [vmem:[%s889_s2] sm:$0xff]  ;;  %s537_s22 = scalar_lea.vmem %s536_s20, 4096  ;;  %p538_p8 = scmp.lt.s32.totalorder %s839_s6, %s536_s20 }
  0x3f   : > { %208 = vadd.xlane.f32.xlu0 %v207_v19  ;;  %v221_v25 = vadd.f32 %v220_v21, %v773_v18  ;;  %v232_v38 = vld [vmem:[%s888_s1 + $0x18] sm:$0xff]  ;;  %v253_v57 = vld [vmem:[%s889_s2 + $0x8] sm:$0xff]  ;;  %v254_v61 = vld [vmem:[%s889_s2 + $0x10] sm:$0xff]  ;;  %p534_p13 = pneg %p533_p12  ;;  %p539_p10 = scmp.lt.s32.totalorder %s537_s22, %s531_s17 }
  0x40   : > { %218 = vadd.xlane.f32.xlu1 %v217_v22  ;;  %v212_v26 = vadd.f32 %v211_v23, %v776_v20  ;;  %v255_v60 = vld [vmem:[%s889_s2 + $0x18] sm:$0xff] }
  0x41   : > { %v222_v27 = vadd.f32 %v221_v25, %v782_v24  ;;  %p540_p0 = por %p539_p10, %p538_p8 }
  0x43   : > { %213 = vadd.xlane.f32.xlu0 %v212_v26  ;;  %p541_p2 = pnand %p540_p0, %p534_p13 }
  0x44   : > { %223 = vadd.xlane.f32.xlu1 %v222_v27 }
  0xcc   : > { %v209_v28 = vpop.xlane.xlu0 %208 }
  0xcd   : > { %v225_v29 = vmul.f32 0.001953125, %v209_v28  ;;  %v219_v30 = vpop.xlane.xlu1 %218 }
  0xce   : > { %v227_v32 = vmul.f32 0.001953125, %v219_v30 }
  0xcf   : > { %v233_v36 = vmul.f32 %v229_v31, %v225_v29 }
  0xd0   : > { %v214_v35 = vpop.xlane.xlu0 %213  ;;  %v235_v41 = vmul.f32 %v231_v33, %v227_v32 }
  0xd1   : > { %v226_v37 = vmul.f32 0.001953125, %v214_v35  ;;  %v224_v39 = vpop.xlane.xlu1 %223  ;;  %v238_v44 = vsel %vm237_vm0, %v233_v36, 0.0 }
  0xd2   : > { %v228_v40 = vmul.f32 0.001953125, %v224_v39  ;;  %v241_v47 = vsel %vm237_vm0, %v235_v41, 0.0 }
  0xd3   : > { %v234_v42 = vmul.f32 %v230_v34, %v226_v37 }
  0xd4   : > { %v236_v43 = vmul.f32 %v232_v38, %v228_v40 }
  0xd5   : > { %v239_v45 = vsel %vm237_vm0, %v234_v42, 0.0 }
  0xd6   : > { %v240_v46 = vadd.f32 %v239_v45, %v238_v44  ;;  %v243_v48 = vsel %vm237_vm0, %v236_v43, 0.0 }
  0xd8   : > { %v242_v49 = vadd.f32 %v241_v47, %v240_v46 }
  0xda   : > { %v244_v50 = vadd.f32 %v243_v48, %v242_v49 }
  0xdc   : > { %v245_v51 = vrot.slane %v244_v50, 4 }
  0xde   : > { %v246_v52 = vadd.f32 %v245_v51, %v244_v50 }
  0xe0   : > { %v247_v53 = vrot.slane %v246_v52, 2 }
  0xe2   : > { %v248_v54 = vadd.f32 %v247_v53, %v246_v52 }
  0xe4   : > { %v249_v55 = vrot.slane %v248_v54, 1 }
  0xe6   : > { %v250_v56 = vadd.f32 %v249_v55, %v248_v54 }
  0xe8   : > { %v251_v59 = vmax.f32 %v250_v56, 0.0 }
  0xea   : > { %v257_v62 = vmul.f32 %v253_v57, %v251_v59  ;;  %v256_v63 = vmul.f32 %v252_v58, %v251_v59  ;;  %v259_v10 = vmul.f32 %v255_v60, %v251_v59  ;;  %v258_v14 = vmul.f32 %v254_v61, %v251_v59 }
  0xec   : > { %v263_v3 = vsel %vm237_vm0, %v257_v62, 0.0  ;;  %v260_v8 = vsel %vm237_vm0, %v256_v63, 0.0  ;;  %v269_v15 = vsel %vm237_vm0, %v259_v10, 0.0  ;;  %v266_v19 = vsel %vm237_vm0, %v258_v14, 0.0 }
  0xed   : > { %264 = vadd.xlane.f32.xlu1 %v263_v3  ;;  %261 = vadd.xlane.f32.xlu0 %v260_v8 }
  0xf1   : > { %270 = vadd.xlane.f32.xlu1 %v269_v15  ;;  %267 = vadd.xlane.f32.xlu0 %v266_v19 }
 0x17a   : > { %v265_v21 = vpop.xlane.xlu1 %264  ;;  %v262_v22 = vpop.xlane.xlu0 %261 }
 0x17b   : > { %v425_v23 = vmul.f32 -1.442695, %v265_v21  ;;  %v424_v25 = vmul.f32 -1.442695, %v262_v22 }
 0x17d   : > { %485 = vpow2.f32 %v425_v23 }
 0x17e   : > { %487 = vpow2.f32 %v424_v25  ;;  %v271_v26 = vpop.xlane.xlu1 %270  ;;  %v268_v27 = vpop.xlane.xlu0 %267 }
 0x17f   : > { %v427_v28 = vmul.f32 -1.442695, %v271_v26  ;;  %v426_v29 = vmul.f32 -1.442695, %v268_v27 }
 0x181   : > { %489 = vpow2.f32 %v427_v28 }
 0x182   : > { %491 = vpow2.f32 %v426_v29 }
 0x187   : > { %v486_v30 = vpop.eup %485 }
 0x188   : > { %v488_v31 = vpop.eup %487  ;;  %v285_v32 = vadd.f32 1.0, %v486_v30 }
 0x189   : > { %v284_v33 = vadd.f32 1.0, %v488_v31 }
 0x18a   : > { %493 = vrcp.f32 %v285_v32 }
 0x18b   : > { %v490_v34 = vpop.eup %489  ;;  %495 = vrcp.f32 %v284_v33 }
 0x18c   : > { %v492_v35 = vpop.eup %491  ;;  %v287_v36 = vadd.f32 1.0, %v490_v34 }
 0x18d   : > { %v286_v37 = vadd.f32 1.0, %v492_v35 }
 0x18e   : > { %497 = vrcp.f32 %v287_v36 }
 0x18f   : > { %499 = vrcp.f32 %v286_v37 }
 0x194   : > { %v494_v38 = vpop.eup %493 }
 0x195   : > { %v496_v39 = vpop.eup %495  ;;  %v300_v40 = vmul.f32 %v494_v38, %v757_v9  ;;  %v301_v41 = vmul.f32 %v494_v38, %v762_v12  ;;  %v302_v42 = vmul.f32 %v494_v38, %v764_v13  ;;  %v303_v43 = vmul.f32 %v494_v38, %v776_v20 }
 0x196   : > { %v296_v44 = vmul.f32 %v496_v39, %v739_v0  ;;  %v297_v45 = vmul.f32 %v496_v39, %v741_v1  ;;  %v298_v46 = vmul.f32 %v496_v39, %v743_v2  ;;  %v299_v47 = vmul.f32 %v496_v39, %v751_v6 }
 0x197   : > { %316 = vst [vmem:[%s188_s4 + $0x20] sm:$0xff] %v300_v40  ;;  %317 = vst [vmem:[%s188_s4 + $0x28] sm:$0xff] %v301_v41 }
 0x198   : > { %318 = vst [vmem:[%s188_s4 + $0x30] sm:$0xff] %v302_v42  ;;  %319 = vst [vmem:[%s188_s4 + $0x38] sm:$0xff] %v303_v43  ;;  %v498_v9 = vpop.eup %497 }
 0x199   : > { %312 = vst [vmem:[%s188_s4] sm:$0xff] %v296_v44  ;;  %313 = vst [vmem:[%s188_s4 + $0x8] sm:$0xff] %v297_v45  ;;  %v500_v0 = vpop.eup %499  ;;  %v308_v1 = vmul.f32 %v498_v9, %v769_v16  ;;  %v309_v2 = vmul.f32 %v498_v9, %v771_v17  ;;  %v310_v6 = vmul.f32 %v498_v9, %v773_v18 }
 0x19a   : > { %314 = vst [vmem:[%s188_s4 + $0x10] sm:$0xff] %v298_v46  ;;  %315 = vst [vmem:[%s188_s4 + $0x18] sm:$0xff] %v299_v47  ;;  %v311_v12 = vmul.f32 %v498_v9, %v782_v24  ;;  %v304_v13 = vmul.f32 %v500_v0, %v747_v4  ;;  %v305_v16 = vmul.f32 %v500_v0, %v749_v5 }
 0x19b   : > { %v306_v17 = vmul.f32 %v500_v0, %v753_v7  ;;  %v307_v18 = vmul.f32 %v500_v0, %v760_v11  ;;  %324 = vst [vmem:[%s188_s4 + $0x60] sm:$0xff] %v308_v1  ;;  %325 = vst [vmem:[%s188_s4 + $0x68] sm:$0xff] %v309_v2 }
 0x19c   : > { %326 = vst [vmem:[%s188_s4 + $0x70] sm:$0xff] %v310_v6  ;;  %327 = vst [vmem:[%s188_s4 + $0x78] sm:$0xff] %v311_v12 }
 0x19d   : > { %320 = vst [vmem:[%s188_s4 + $0x40] sm:$0xff] %v304_v13  ;;  %321 = vst [vmem:[%s188_s4 + $0x48] sm:$0xff] %v305_v16 }
 0x19e   : > { %322 = vst [vmem:[%s188_s4 + $0x50] sm:$0xff] %v306_v17  ;;  %323 = vst [vmem:[%s188_s4 + $0x58] sm:$0xff] %v307_v18 }
 0x19f   : > { %544 = shalt.err (!%p541_p2)
}
 0x1a0   : > { %s545_s26 = scalar_lea.hbm %s837_s7, 2048  ;;  %s549_s29 = scalar_lea.hbm %s890_s3, 4096 }
 0x1a1   : > { %p546_p4 = scmp.ne.s32.totalorder %s837_s7, %s545_s26  ;;  %p550_p9 = scmp.lt.u32.totalorder %s837_s7, %s890_s3 }
 0x1a2   : > { %p551_p1 = scmp.lt.u32.totalorder %s549_s29, %s545_s26  ;;  %p553_p6 = scmp.lt.u32.totalorder %s545_s26, %s837_s7 }
 0x1a3   : > { %p547_p5 = pnand %p546_p4, %p897_p11 }
 0x1a4   : > { %p552_p3 = por %p551_p1, %p550_p9 }
 0x1a5   : > { %p548_p7 = pneg %p547_p5 }
 0x1a6   : > { %p554_p12 = por %p553_p6, %p552_p3 }
 0x1a8   : > { %p555_p13 = pnand %p554_p12, %p548_p7 }
 0x1aa   : > { %558 = shalt.err (!%p555_p13)
}
 0x1ab   : > { %s603_s11 = smov 512   ;;  %s604_s23 = smov 32  }
 0x1ac   : > { %437 = dma.vmem_to_hbm [thread:$0]  (%p897_p11), %s839_s6, 2048, %s837_s7, %s329_s8, %s603_s11, %s603_s11, %s604_s23  }
 0x1ad PF: > { %s357_s4 = sand.u32 1, %s585_s12   ;;  %p898_p8 = scmp.ne.s32.totalorder %s895_s25, 0 }
 0x1ae   : > { %p899_p10 = scmp.ge.s32.totalorder %s597_s15, 2  ;;  %s358_s16 = scalar_lea.sflag [#allocation4], %s357_s4 }
 0x1b0   : > { %p444_p0 = pnand %p899_p10, %p898_p8 }
 0x1b2   : > { %580 = dma.done.wait (!%p444_p0), %s358_s16, 2048  }
 0x1b3   : > { %582 = vsyncadd (!%p444_p0), %s358_s16, 4294965248  ;;  %p16_p2 = scmp.ge.s32.totalorder %s650_s18, 4   ;;  %s900_s12 = smov %s589_s13 }
 0x1b4   : > { %s901_s13 = smov %s593_s14  ;;  %s902_s14 = smov %s662_s21 }
 0x1b5   : > { %s903_s15 = smov %s650_s18  ;;  %18 = sbr.rel (!%p16_p2) target bundleno = 5 (0x5), region = 77 }
 0x1bc   :  { %363 = vsyncpa [#allocation3], 1 }
 0x1bd   :  { %365 = vsyncpa [#allocation3 + $0x1], 1 }
 0x1be   :  { %366 = vsyncpa [#allocation4], 1 }
 0x1bf   :  { %368 = vsyncpa [#allocation4 + $0x1], 1 }

</bundles_post_ra>
